<compile_context>
chip_gen: v6e
topology: v6e:2x2x1
jax: 0.10.0
libtpu: 0.0.40
codegen_flags: <defaults>
</compile_context>

<pallas_src>
import jax
import jax.numpy as jnp
import numpy as np
from jax.experimental import pallas as pl
from jax.experimental.pallas import tpu as pltpu

LANES = 128   # vreg lane width; E*H = 4*32 = 128 fills it exactly
TILE_B = 8    # batch rows per grid step (one sublane group)


def _make_kernel(E, C, TB):
    """Kernel closure with static expert count E, context pairs C, tile rows TB."""

    def moe_kernel(act_ref, pblob_ref, out_ref, hbuf_ref):
        # act   : (TB, 128)  lanes 0..2C-1 = interleaved ctx (x0,y0,...),
        #                    lane 2C = input x, rest zero
        # pblob : (136, 128) rows 0: W1 flat (lane=e*H+h), 1: B1 flat,
        #                    2: GW1 (H lanes), 3: GB1, 4: B2 (E lanes), 5: GB2;
        #                    rows 8..135: lane-dense packed matmul weights
        #                      cols 0:E  block-diag expert W2, cols E:2E GW2
        # out   : (TB, 128)  lane 0 = combined output, lanes 1..E = weights w
        # hbuf  : ((2+C)*TB, 128) VMEM scratch for stacked hidden slabs
        act = act_ref[...]

        w1 = pblob_ref[0:1, :]
        b1 = pblob_ref[1:2, :]
        gw1 = pblob_ref[2:3, :]
        gb1 = pblob_ref[3:4, :]
        b2 = pblob_ref[4:5, 0:E]
        gb2 = pblob_ref[5:6, 0:E]
        pmat = pblob_ref[8:8 + LANES, :]          # (128, 128) lane-dense RHS

        x = act[:, 2 * C:2 * C + 1]               # (TB, 1) input column

        # Hidden slabs: each is one full-width (TB,128) VPU op covering all
        # experts at once (padded lanes are exactly zero).  Stored straight
        # into VMEM scratch -- no concat materialization.
        hbuf_ref[0:TB, :] = jnp.maximum(x * gw1 + gb1, 0.0)          # gate hidden
        hbuf_ref[TB:2 * TB, :] = jnp.maximum(x * w1 + b1, 0.0)       # expert hidden(x)
        for c in range(C):                                           # unrolled, C=4
            xc = act[:, 2 * c:2 * c + 1]
            hbuf_ref[(2 + c) * TB:(3 + c) * TB, :] = jnp.maximum(xc * w1 + b1, 0.0)

        # One MXU matmul: gate logits + every per-expert projection at once.
        res = jnp.dot(hbuf_ref[...], pmat, preferred_element_type=jnp.float32)

        logits = res[0:TB, E:2 * E] + gb2          # (TB, E) gate logits
        exp_out = res[TB:2 * TB, 0:E] + b2         # (TB, E) expert outputs on x

        err = jnp.zeros((TB, E), jnp.float32)
        for c in range(C):
            pred = res[(2 + c) * TB:(3 + c) * TB, 0:E] + b2
            d = pred - act[:, 2 * c + 1:2 * c + 2]                   # ctx y_c
            err = err + d * d

        # prior = softmax(logits); bayes = softmax(-err);
        # w = prior*bayes / sum(prior*bayes) -> the softmax denominators cancel,
        # a single (EUP) reciprocal survives.  Both exponents max-stabilized.
        pe = jnp.exp(logits - jnp.max(logits, axis=1, keepdims=True))
        be = jnp.exp(jnp.min(err, axis=1, keepdims=True) - err)
        u = pe * be
        denom = jnp.sum(u, axis=1, keepdims=True)
        inv = pl.reciprocal(denom, approx=True)
        inv = inv * (2.0 - denom * inv)            # one Newton step -> ~exact f32
        w = u * inv                                # (TB, E) final weights

        out_col = jnp.sum(w * exp_out, axis=1, keepdims=True)        # (TB, 1)
        pad = jnp.zeros((TB, LANES - 1 - E), jnp.float32)
        # Single full-vreg, unmasked store of a lane-dense block.
        out_ref[...] = jnp.concatenate([out_col, w, pad], axis=1)

    return moe_kernel


def samoe_ab2_forward(context, x, pblob, expert_trace):
    """context: (B, 2C), x: (B, 1), pblob: packed params, expert_trace: (E,).

    Returns (combined_output (B, 1), new_expert_trace (E,)).
    """
    B = x.shape[0]
    C = context.shape[1] // 2
    E = expert_trace.shape[0]
    TB = TILE_B
    G = pl.cdiv(B, TB)
    Bpad = G * TB

    # Merge ctx + x into one lane-dense activation blob (one input DMA stream).
    act = jnp.concatenate([context, x], axis=1).astype(jnp.float32)  # (B, 2C+1)
    act = jnp.pad(act, ((0, Bpad - B), (0, LANES - (2 * C + 1))))    # (Bpad, 128)

    kernel = _make_kernel(E, C, TB)
    flops = int(G) * 2 * (2 + C) * TB * LANES * LANES
    transcendentals = int(G) * TB * (2 * E + 1)
    bytes_accessed = 4 * (Bpad * LANES + pblob.size + Bpad * LANES)

    blk = pl.pallas_call(
        kernel,
        out_shape=jax.ShapeDtypeStruct((Bpad, LANES), jnp.float32),
        grid_spec=pltpu.PrefetchScalarGridSpec(
            num_scalar_prefetch=0,
            grid=(G,),
            in_specs=[
                pl.BlockSpec((TB, LANES), lambda g: (g, 0)),      # activations
                pl.BlockSpec((8 + LANES, LANES), lambda g: (0, 0)),  # params (resident)
            ],
            out_specs=pl.BlockSpec((TB, LANES), lambda g: (g, 0)),
            scratch_shapes=[pltpu.VMEM(((2 + C) * TB, LANES), jnp.float32)],
        ),
        compiler_params=pltpu.CompilerParams(
            dimension_semantics=("parallel",)),
        cost_estimate=pl.CostEstimate(
            flops=flops, transcendentals=transcendentals,
            bytes_accessed=bytes_accessed),
    )(act, pblob)

    out = blk[:B, 0:1]
    new_trace = expert_trace + jnp.sum(blk[:B, 1:1 + E], axis=0)
    return out, new_trace


samoe_ab2_forward = jax.jit(samoe_ab2_forward)


def init_params(key, num_experts=4, hidden_size=32):
    """Deterministic synthetic parameters (PyTorch-style uniform(-1/sqrt(fan_in)))."""
    E, H = num_experts, hidden_size
    ks = jax.random.split(key, 8)

    def u(k, shape, fan_in):
        bound = 1.0 / np.sqrt(fan_in)
        return jax.random.uniform(k, shape, jnp.float32, -bound, bound)

    return {
        # experts: Linear(1,H) -> ReLU -> Linear(H,1), stacked along expert axis
        "W1": u(ks[0], (E, H), 1),
        "B1": u(ks[1], (E, H), 1),
        "W2": u(ks[2], (E, H), H),
        "B2": u(ks[3], (E, 1), H),
        # prior gate: Linear(1,H) -> ReLU -> Linear(H,E) -> Softmax
        "GW1": u(ks[4], (1, H), 1),
        "GB1": u(ks[5], (1, H), 1),
        "GW2": u(ks[6], (H, E), H),
        "GB2": u(ks[7], (1, E), H),
    }


def pack_params(params):
    """Pack all 8 parameter tensors into ONE tile-aligned (136, 128) blob (done once)."""
    E, H = params["W1"].shape
    EH = E * H
    assert params["W2"].shape == (E, H) and params["B2"].shape == (E, 1)
    assert EH <= LANES and H <= LANES and 2 * E <= LANES

    pblob = jnp.zeros((8 + LANES, LANES), jnp.float32)
    pblob = pblob.at[0, :EH].set(params["W1"].reshape(-1))
    pblob = pblob.at[1, :EH].set(params["B1"].reshape(-1))
    pblob = pblob.at[2, :H].set(params["GW1"].reshape(-1))
    pblob = pblob.at[3, :H].set(params["GB1"].reshape(-1))
    pblob = pblob.at[4, :E].set(params["B2"].reshape(-1))
    pblob = pblob.at[5, :E].set(params["GB2"].reshape(-1))
    rows = jnp.arange(EH)
    pblob = pblob.at[8 + rows, rows // H].set(params["W2"].reshape(-1))  # block-diag W2
    pblob = pblob.at[8:8 + H, E:2 * E].set(params["GW2"])                # padded gate W2
    return pblob


def reference_forward(context, x, params, expert_trace):
    """Pure-JAX reference mirroring the PyTorch module, for correctness check."""
    cx = context[:, 0::2]
    cy = context[:, 1::2]
    W1, B1, W2, B2 = params["W1"], params["B1"], params["W2"], params["B2"]
    GW1, GB1, GW2, GB2 = params["GW1"], params["GB1"], params["GW2"], params["GB2"]

    # prior gate
    hg = jax.nn.relu(x @ GW1 + GB1)
    prior = jax.nn.softmax(hg @ GW2 + GB2, axis=1)

    # bayes weights from context errors
    hid = jax.nn.relu(cx[:, :, None, None] * W1[None, None] + B1[None, None])  # (B,C,E,H)
    pred = jnp.sum(hid * W2[None, None], axis=-1) + B2[None, None, :, 0]        # (B,C,E)
    errors = jnp.sum((pred - cy[:, :, None]) ** 2, axis=1)                      # (B,E)
    bayes = jax.nn.softmax(-errors, axis=1)

    w = bayes * prior
    w = w / jnp.sum(w, axis=1, keepdims=True)

    hid_x = jax.nn.relu(x[:, None, :] * W1[None] + B1[None])                    # (B,E,H)
    expert_out = jnp.sum(hid_x * W2[None], axis=-1) + B2[None, :, 0]            # (B,E)

    out = jnp.sum(w * expert_out, axis=1, keepdims=True)
    new_trace = expert_trace + jnp.sum(w, axis=0)
    return out, new_trace


if __name__ == "__main__":
    NUM_EXPERTS = 4
    CONTEXT_SIZE = 8   # 4 interleaved (x, y) context pairs, as in the reference
    HIDDEN = 32

    key = jax.random.PRNGKey(0)
    k_p, k_data = jax.random.split(key)

    params = init_params(k_p, NUM_EXPERTS, HIDDEN)
    pblob = pack_params(params)            # packed once at "init" time
    expert_trace = jnp.ones((NUM_EXPERTS,), jnp.float32)

    # B=8: single grid step.  B=20: 3 grid steps + row padding, parameters
    # stay VMEM-resident across steps.
    for B in (8, 20):
        k_ctx, k_x, k_data = jax.random.split(k_data, 3)
        context = jax.random.normal(k_ctx, (B, CONTEXT_SIZE), jnp.float32)
        x = jax.random.normal(k_x, (B, 1), jnp.float32)

        out, new_trace = samoe_ab2_forward(context, x, pblob, expert_trace)
        out = jax.block_until_ready(out)
        new_trace = jax.block_until_ready(new_trace)

        ref_out, ref_trace = reference_forward(context, x, params, expert_trace)
        np.testing.assert_allclose(np.asarray(out), np.asarray(ref_out),
                                   rtol=1e-4, atol=1e-5)
        np.testing.assert_allclose(np.asarray(new_trace), np.asarray(ref_trace),
                                   rtol=1e-4, atol=1e-5)
        assert out.shape == (B, 1) and new_trace.shape == (NUM_EXPERTS,)

    # TODO(synk): evolve_experts (add/prune experts) is host-side control flow
    # with dynamic expert counts and is intentionally not part of the kernel.
    print("KERNEL_OK")
</pallas_src>

<mosaic_0001>
module attributes {stable_mosaic.version = 11 : i64} {
  func.func @moe_kernel(%arg0: i32, %arg1: memref<8x128xf32, #tpu.memory_space<vmem>>, %arg2: memref<136x128xf32, #tpu.memory_space<vmem>>, %arg3: memref<8x128xf32, #tpu.memory_space<vmem>>, %arg4: memref<48x128xf32, #tpu.memory_space<vmem>>) attributes {dimension_semantics = [#tpu.dimension_semantics<parallel>], iteration_bounds = array<i64: 1>, scalar_prefetch = 0 : i64, scratch_operands = 1 : i64, tpu.core_type = #tpu.core_type<tc>, window_params = [{transform_indices = @transform_0, window_bounds = array<i64: 8, 128>}, {pipeline_mode = #tpu.pipeline_mode<synchronous>, transform_indices = @transform_1, window_bounds = array<i64: 136, 128>}, {transform_indices = @transform_2, window_bounds = array<i64: 8, 128>}]} {
    %c0 = arith.constant 0 : index
    %c0_0 = arith.constant 0 : index
    %0 = vector.load %arg1[%c0, %c0_0] : memref<8x128xf32, #tpu.memory_space<vmem>>, vector<8x128xf32>
    %c0_1 = arith.constant 0 : index
    %c0_2 = arith.constant 0 : index
    %1 = vector.load %arg2[%c0_1, %c0_2] : memref<136x128xf32, #tpu.memory_space<vmem>>, vector<1x128xf32>
    %c1 = arith.constant 1 : index
    %c0_3 = arith.constant 0 : index
    %2 = vector.load %arg2[%c1, %c0_3] : memref<136x128xf32, #tpu.memory_space<vmem>>, vector<1x128xf32>
    %c2 = arith.constant 2 : index
    %c0_4 = arith.constant 0 : index
    %3 = vector.load %arg2[%c2, %c0_4] : memref<136x128xf32, #tpu.memory_space<vmem>>, vector<1x128xf32>
    %c3 = arith.constant 3 : index
    %c0_5 = arith.constant 0 : index
    %4 = vector.load %arg2[%c3, %c0_5] : memref<136x128xf32, #tpu.memory_space<vmem>>, vector<1x128xf32>
    %c4 = arith.constant 4 : index
    %c0_6 = arith.constant 0 : index
    %5 = vector.load %arg2[%c4, %c0_6] : memref<136x128xf32, #tpu.memory_space<vmem>>, vector<1x4xf32>
    %c5 = arith.constant 5 : index
    %c0_7 = arith.constant 0 : index
    %6 = vector.load %arg2[%c5, %c0_7] : memref<136x128xf32, #tpu.memory_space<vmem>>, vector<1x4xf32>
    %c8 = arith.constant 8 : index
    %c0_8 = arith.constant 0 : index
    %7 = vector.load %arg2[%c8, %c0_8] : memref<136x128xf32, #tpu.memory_space<vmem>>, vector<128x128xf32>
    %8 = vector.extract_strided_slice %0 {offsets = [0, 8], sizes = [8, 1], strides = [1, 1]} : vector<8x128xf32> to vector<8x1xf32>
    %9 = vector.broadcast %8 : vector<8x1xf32> to vector<8x128xf32>
    %10 = vector.broadcast %3 : vector<1x128xf32> to vector<8x128xf32>
    %11 = arith.mulf %9, %10 : vector<8x128xf32>
    %12 = vector.broadcast %4 : vector<1x128xf32> to vector<8x128xf32>
    %13 = arith.addf %11, %12 : vector<8x128xf32>
    %cst = arith.constant 0.000000e+00 : f32
    %14 = vector.broadcast %cst : f32 to vector<8x128xf32>
    %15 = arith.maximumf %13, %14 : vector<8x128xf32>
    %c0_9 = arith.constant 0 : index
    %c0_10 = arith.constant 0 : index
    %16 = vector.load %arg4[%c0_9, %c0_10] : memref<48x128xf32, #tpu.memory_space<vmem>>, vector<8x128xf32>
    tpu.vector_store %arg4[%c0_9, %c0_10], %15 {strides = array<i32>} : memref<48x128xf32, #tpu.memory_space<vmem>>, vector<8x128xf32>,
    %17 = vector.broadcast %8 : vector<8x1xf32> to vector<8x128xf32>
    %18 = vector.broadcast %1 : vector<1x128xf32> to vector<8x128xf32>
    %19 = arith.mulf %17, %18 : vector<8x128xf32>
    %20 = vector.broadcast %2 : vector<1x128xf32> to vector<8x128xf32>
    %21 = arith.addf %19, %20 : vector<8x128xf32>
    %cst_11 = arith.constant 0.000000e+00 : f32
    %22 = vector.broadcast %cst_11 : f32 to vector<8x128xf32>
    %23 = arith.maximumf %21, %22 : vector<8x128xf32>
    %c8_12 = arith.constant 8 : index
    %c0_13 = arith.constant 0 : index
    %24 = vector.load %arg4[%c8_12, %c0_13] : memref<48x128xf32, #tpu.memory_space<vmem>>, vector<8x128xf32>
    tpu.vector_store %arg4[%c8_12, %c0_13], %23 {strides = array<i32>} : memref<48x128xf32, #tpu.memory_space<vmem>>, vector<8x128xf32>,
    %25 = vector.extract_strided_slice %0 {offsets = [0, 0], sizes = [8, 1], strides = [1, 1]} : vector<8x128xf32> to vector<8x1xf32>
    %26 = vector.broadcast %25 : vector<8x1xf32> to vector<8x128xf32>
    %27 = vector.broadcast %1 : vector<1x128xf32> to vector<8x128xf32>
    %28 = arith.mulf %26, %27 : vector<8x128xf32>
    %29 = vector.broadcast %2 : vector<1x128xf32> to vector<8x128xf32>
    %30 = arith.addf %28, %29 : vector<8x128xf32>
    %cst_14 = arith.constant 0.000000e+00 : f32
    %31 = vector.broadcast %cst_14 : f32 to vector<8x128xf32>
    %32 = arith.maximumf %30, %31 : vector<8x128xf32>
    %c16 = arith.constant 16 : index
    %c0_15 = arith.constant 0 : index
    %33 = vector.load %arg4[%c16, %c0_15] : memref<48x128xf32, #tpu.memory_space<vmem>>, vector<8x128xf32>
    tpu.vector_store %arg4[%c16, %c0_15], %32 {strides = array<i32>} : memref<48x128xf32, #tpu.memory_space<vmem>>, vector<8x128xf32>,
    %34 = vector.extract_strided_slice %0 {offsets = [0, 2], sizes = [8, 1], strides = [1, 1]} : vector<8x128xf32> to vector<8x1xf32>
    %35 = vector.broadcast %34 : vector<8x1xf32> to vector<8x128xf32>
    %36 = vector.broadcast %1 : vector<1x128xf32> to vector<8x128xf32>
    %37 = arith.mulf %35, %36 : vector<8x128xf32>
    %38 = vector.broadcast %2 : vector<1x128xf32> to vector<8x128xf32>
    %39 = arith.addf %37, %38 : vector<8x128xf32>
    %cst_16 = arith.constant 0.000000e+00 : f32
    %40 = vector.broadcast %cst_16 : f32 to vector<8x128xf32>
    %41 = arith.maximumf %39, %40 : vector<8x128xf32>
    %c24 = arith.constant 24 : index
    %c0_17 = arith.constant 0 : index
    %42 = vector.load %arg4[%c24, %c0_17] : memref<48x128xf32, #tpu.memory_space<vmem>>, vector<8x128xf32>
    tpu.vector_store %arg4[%c24, %c0_17], %41 {strides = array<i32>} : memref<48x128xf32, #tpu.memory_space<vmem>>, vector<8x128xf32>,
    %43 = vector.extract_strided_slice %0 {offsets = [0, 4], sizes = [8, 1], strides = [1, 1]} : vector<8x128xf32> to vector<8x1xf32>
    %44 = vector.broadcast %43 : vector<8x1xf32> to vector<8x128xf32>
    %45 = vector.broadcast %1 : vector<1x128xf32> to vector<8x128xf32>
    %46 = arith.mulf %44, %45 : vector<8x128xf32>
    %47 = vector.broadcast %2 : vector<1x128xf32> to vector<8x128xf32>
    %48 = arith.addf %46, %47 : vector<8x128xf32>
    %cst_18 = arith.constant 0.000000e+00 : f32
    %49 = vector.broadcast %cst_18 : f32 to vector<8x128xf32>
    %50 = arith.maximumf %48, %49 : vector<8x128xf32>
    %c32 = arith.constant 32 : index
    %c0_19 = arith.constant 0 : index
    %51 = vector.load %arg4[%c32, %c0_19] : memref<48x128xf32, #tpu.memory_space<vmem>>, vector<8x128xf32>
    tpu.vector_store %arg4[%c32, %c0_19], %50 {strides = array<i32>} : memref<48x128xf32, #tpu.memory_space<vmem>>, vector<8x128xf32>,
    %52 = vector.extract_strided_slice %0 {offsets = [0, 6], sizes = [8, 1], strides = [1, 1]} : vector<8x128xf32> to vector<8x1xf32>
    %53 = vector.broadcast %52 : vector<8x1xf32> to vector<8x128xf32>
    %54 = vector.broadcast %1 : vector<1x128xf32> to vector<8x128xf32>
    %55 = arith.mulf %53, %54 : vector<8x128xf32>
    %56 = vector.broadcast %2 : vector<1x128xf32> to vector<8x128xf32>
    %57 = arith.addf %55, %56 : vector<8x128xf32>
    %cst_20 = arith.constant 0.000000e+00 : f32
    %58 = vector.broadcast %cst_20 : f32 to vector<8x128xf32>
    %59 = arith.maximumf %57, %58 : vector<8x128xf32>
    %c40 = arith.constant 40 : index
    %c0_21 = arith.constant 0 : index
    %60 = vector.load %arg4[%c40, %c0_21] : memref<48x128xf32, #tpu.memory_space<vmem>>, vector<8x128xf32>
    tpu.vector_store %arg4[%c40, %c0_21], %59 {strides = array<i32>} : memref<48x128xf32, #tpu.memory_space<vmem>>, vector<8x128xf32>,
    %c0_22 = arith.constant 0 : index
    %c0_23 = arith.constant 0 : index
    %61 = vector.load %arg4[%c0_22, %c0_23] : memref<48x128xf32, #tpu.memory_space<vmem>>, vector<48x128xf32>
    %cst_24 = arith.constant dense<0.000000e+00> : vector<48x128xf32>
    %62 = tpu.matmul %61, %7, %cst_24 {dimension_numbers = #tpu.dot_dimension_numbers<[1], [0], [0], [1], [0, 0, 1, 1], [], []>} : vector<48x128xf32>, vector<128x128xf32>, vector<48x128xf32> -> vector<48x128xf32>
    %63 = vector.extract_strided_slice %62 {offsets = [0, 4], sizes = [8, 4], strides = [1, 1]} : vector<48x128xf32> to vector<8x4xf32>
    %64 = vector.broadcast %6 : vector<1x4xf32> to vector<8x4xf32>
    %65 = arith.addf %63, %64 : vector<8x4xf32>
    %66 = vector.extract_strided_slice %62 {offsets = [8, 0], sizes = [8, 4], strides = [1, 1]} : vector<48x128xf32> to vector<8x4xf32>
    %67 = vector.broadcast %5 : vector<1x4xf32> to vector<8x4xf32>
    %68 = arith.addf %66, %67 : vector<8x4xf32>
    %cst_25 = arith.constant 0.000000e+00 : f32
    %69 = vector.broadcast %cst_25 : f32 to vector<8x4xf32>
    %70 = vector.extract_strided_slice %62 {offsets = [16, 0], sizes = [8, 4], strides = [1, 1]} : vector<48x128xf32> to vector<8x4xf32>
    %71 = vector.broadcast %5 : vector<1x4xf32> to vector<8x4xf32>
    %72 = arith.addf %70, %71 : vector<8x4xf32>
    %73 = vector.extract_strided_slice %0 {offsets = [0, 1], sizes = [8, 1], strides = [1, 1]} : vector<8x128xf32> to vector<8x1xf32>
    %74 = vector.broadcast %73 : vector<8x1xf32> to vector<8x4xf32>
    %75 = arith.subf %72, %74 : vector<8x4xf32>
    %76 = arith.mulf %75, %75 : vector<8x4xf32>
    %77 = arith.addf %69, %76 : vector<8x4xf32>
    %78 = vector.extract_strided_slice %62 {offsets = [24, 0], sizes = [8, 4], strides = [1, 1]} : vector<48x128xf32> to vector<8x4xf32>
    %79 = vector.broadcast %5 : vector<1x4xf32> to vector<8x4xf32>
    %80 = arith.addf %78, %79 : vector<8x4xf32>
    %81 = vector.extract_strided_slice %0 {offsets = [0, 3], sizes = [8, 1], strides = [1, 1]} : vector<8x128xf32> to vector<8x1xf32>
    %82 = vector.broadcast %81 : vector<8x1xf32> to vector<8x4xf32>
    %83 = arith.subf %80, %82 : vector<8x4xf32>
    %84 = arith.mulf %83, %83 : vector<8x4xf32>
    %85 = arith.addf %77, %84 : vector<8x4xf32>
    %86 = vector.extract_strided_slice %62 {offsets = [32, 0], sizes = [8, 4], strides = [1, 1]} : vector<48x128xf32> to vector<8x4xf32>
    %87 = vector.broadcast %5 : vector<1x4xf32> to vector<8x4xf32>
    %88 = arith.addf %86, %87 : vector<8x4xf32>
    %89 = vector.extract_strided_slice %0 {offsets = [0, 5], sizes = [8, 1], strides = [1, 1]} : vector<8x128xf32> to vector<8x1xf32>
    %90 = vector.broadcast %89 : vector<8x1xf32> to vector<8x4xf32>
    %91 = arith.subf %88, %90 : vector<8x4xf32>
    %92 = arith.mulf %91, %91 : vector<8x4xf32>
    %93 = arith.addf %85, %92 : vector<8x4xf32>
    %94 = vector.extract_strided_slice %62 {offsets = [40, 0], sizes = [8, 4], strides = [1, 1]} : vector<48x128xf32> to vector<8x4xf32>
    %95 = vector.broadcast %5 : vector<1x4xf32> to vector<8x4xf32>
    %96 = arith.addf %94, %95 : vector<8x4xf32>
    %97 = vector.extract_strided_slice %0 {offsets = [0, 7], sizes = [8, 1], strides = [1, 1]} : vector<8x128xf32> to vector<8x1xf32>
    %98 = vector.broadcast %97 : vector<8x1xf32> to vector<8x4xf32>
    %99 = arith.subf %96, %98 : vector<8x4xf32>
    %100 = arith.mulf %99, %99 : vector<8x4xf32>
    %101 = arith.addf %93, %100 : vector<8x4xf32>
    %cst_26 = arith.constant dense<0xFF800000> : vector<8xf32>
    %102 = vector.multi_reduction <maximumf>, %65, %cst_26 [1] : vector<8x4xf32> to vector<8xf32>
    %103 = vector.shape_cast %102 : vector<8xf32> to vector<8x1xf32>
    %104 = vector.broadcast %103 : vector<8x1xf32> to vector<8x4xf32>
    %105 = arith.subf %65, %104 : vector<8x4xf32>
    %106 = math.exp %105 : vector<8x4xf32>
    %cst_27 = arith.constant dense<0x7F800000> : vector<8xf32>
    %107 = vector.multi_reduction <minimumf>, %101, %cst_27 [1] : vector<8x4xf32> to vector<8xf32>
    %108 = vector.shape_cast %107 : vector<8xf32> to vector<8x1xf32>
    %109 = vector.broadcast %108 : vector<8x1xf32> to vector<8x4xf32>
    %110 = arith.subf %109, %101 : vector<8x4xf32>
    %111 = math.exp %110 : vector<8x4xf32>
    %112 = arith.mulf %106, %111 : vector<8x4xf32>
    %cst_28 = arith.constant dense<0.000000e+00> : vector<8xf32>
    %113 = vector.multi_reduction <add>, %112, %cst_28 [1] : vector<8x4xf32> to vector<8xf32>
    %114 = vector.shape_cast %113 : vector<8xf32> to vector<8x1xf32>
    %115 = tpu.reciprocal %114 {approx = true} : vector<8x1xf32> -> vector<8x1xf32>
    %116 = arith.mulf %114, %115 : vector<8x1xf32>
    %cst_29 = arith.constant 2.000000e+00 : f32
    %117 = vector.broadcast %cst_29 : f32 to vector<8x1xf32>
    %118 = arith.subf %117, %116 : vector<8x1xf32>
    %119 = arith.mulf %115, %118 : vector<8x1xf32>
    %120 = vector.broadcast %119 : vector<8x1xf32> to vector<8x4xf32>
    %121 = arith.mulf %112, %120 : vector<8x4xf32>
    %122 = arith.mulf %121, %68 : vector<8x4xf32>
    %cst_30 = arith.constant dense<0.000000e+00> : vector<8xf32>
    %123 = vector.multi_reduction <add>, %122, %cst_30 [1] : vector<8x4xf32> to vector<8xf32>
    %124 = vector.shape_cast %123 : vector<8xf32> to vector<8x1xf32>
    %cst_31 = arith.constant 0.000000e+00 : f32
    %125 = vector.broadcast %cst_31 : f32 to vector<8x123xf32>
    %126 = tpu.concatenate %124, %121, %125 in 1 : vector<8x1xf32>, vector<8x4xf32>, vector<8x123xf32> -> vector<8x128xf32>
    %c0_32 = arith.constant 0 : index
    %c0_33 = arith.constant 0 : index
    %127 = vector.load %arg3[%c0_32, %c0_33] : memref<8x128xf32, #tpu.memory_space<vmem>>, vector<8x128xf32>
    tpu.vector_store %arg3[%c0_32, %c0_33], %126 {strides = array<i32>} : memref<8x128xf32, #tpu.memory_space<vmem>>, vector<8x128xf32>,
    return
  }
  func.func @transform_0(%arg0: i32) -> (i32, i32) {
    %c0_i32 = arith.constant 0 : i32
    %c0_i32_0 = arith.constant 0 : i32
    return %arg0, %c0_i32 : i32, i32
  }
  func.func @transform_1(%arg0: i32) -> (i32, i32) {
    %c0_i32 = arith.constant 0 : i32
    %c0_i32_0 = arith.constant 0 : i32
    %c0_i32_1 = arith.constant 0 : i32
    return %c0_i32, %c0_i32_0 : i32, i32
  }
  func.func @transform_2(%arg0: i32) -> (i32, i32) {
    %c0_i32 = arith.constant 0 : i32
    %c0_i32_0 = arith.constant 0 : i32
    return %arg0, %c0_i32 : i32, i32
  }
}

</mosaic_0001>

<bundles_post_ra>
// kernel: samoe_ab2_forward.1
= control target key start
LH: loop header
LB: loop body
LE: loop exit
PB: predicated region body
PF: predicated region fallthrough
CT: control target
= control target key end

     0   :  { %7 = vsyncpa [#allocation4], 0  ;;  %s466_s9 = smov [#allocation3]   ;;  %s522_s0 = inlined_call_operand.vmem [shape: f32[8,128], index: 0, kind: input, shape index: {}]   ;;  %s523_s1 = inlined_call_operand.hbm [shape: f32[136,128], index: 1, kind: input, shape index: {}]   ;;  %s524_s2 = inlined_call_operand.vmem [shape: f32[8,128], index: 2, kind: output, shape index: {}]  }
   0x1   :  { %s15_s10 = sshll.u32 %s466_s9, 4  ;;  %s16_s10 = int_to_ptr.vmem [resolvable:$true] %s15_s10 }
   0x2   :  { %s452_s11 = scalar_lea.vmem %s16_s10, 2176  ;;  %p457_p1 = scmp.lt.s32.totalorder %s16_s10, %s16_s10 }
   0x3   :  { %p453_p0 = scmp.ne.s32.totalorder %s16_s10, %s452_s11  ;;  %p458_p2 = scmp.lt.s32.totalorder %s452_s11, %s452_s11 }
   0x5   :  { %p459_p3 = por %p458_p2, %p457_p1 }
   0x7   :  { %p460_p4 = pnand %p459_p3, %p453_p0 }
   0x9   :  { %463 = shalt.err (!%p460_p4)
}
   0xa   :  { %s467_s12 = smov 128   ;;  %s468_s13 = smov 8  }
   0xb   :  { %21 = dma.hbm_to_vmem [thread:$0]  %s523_s1, 2176, %s16_s10, [#allocation4], %s467_s12, %s467_s12, %s468_s13  }
   0xc   :  { %464 = dma.done.wait [#allocation4], 2176  }
   0xd   :  { %465 = vsyncadd [#allocation4], 4294965120  ;;  %v469_v0 = vmov 4   ;;  %v470_v1 = vmov 0   ;;  %v502_v2 = vld [vmem:[%s522_s0] sm:$0xff]  ;;  %v46_v4 = vld [vmem:[#allocation3 + $0x78] sm:$0xff] }
   0xe   :  { %431 = vset.pattern.permute.xlu1 %v469_v0  ;;  %429 = vset.pattern.permute.xlu0 %v470_v1  ;;  %v47_v3 = vld [vmem:[#allocation3 + $0x80] sm:$0xff]  ;;  %v471_v5 = vmov 6   ;;  %v472_v6 = vmov 2   ;;  %v45_v7 = vld [vmem:[#allocation3 + $0x70] sm:$0xff]  ;;  %v44_v8 = vld [vmem:[#allocation3 + $0x68] sm:$0xff]  ;;  %v473_v10 = vmov 8  }
   0xf   :  { %94 = vperm.xlu1 %431, %v502_v2   ;;  %78 = vperm.xlu0 %429, %v502_v2   ;;  %v43_v9 = vld [vmem:[#allocation3 + $0x60] sm:$0xff]  ;;  %v42_v11 = vld [vmem:[#allocation3 + $0x58] sm:$0xff]  ;;  %v41_v12 = vld [vmem:[#allocation3 + $0x50] sm:$0xff]  ;;  %v474_v22 = vmov 3   ;;  %v475_v23 = vmov 1   ;;  %v476_v24 = vmov 5  }
  0x10   :  { %382 = vmatprep.subr.mxu1 %v47_v3  ;;  %341 = vmatprep.subr.mxu0 %v47_v3  ;;  %v40_v13 = vld [vmem:[#allocation3 + $0x48] sm:$0xff]  ;;  %v39_v14 = vld [vmem:[#allocation3 + $0x40] sm:$0xff]  ;;  %v38_v15 = vld [vmem:[#allocation3 + $0x38] sm:$0xff]  ;;  %v477_v25 = vmov 7   ;;  %s478_s0 = smov 4   ;;  %vm256_vm0 = vcmask 64544  }
  0x11   :  { %398 = vmatpush3.msra.mxu1 %v47_v3  ;;  %342 = vmatpush3.msra.mxu0 %v47_v3  ;;  %v37_v16 = vld [vmem:[#allocation3 + $0x30] sm:$0xff]  ;;  %v36_v17 = vld [vmem:[#allocation3 + $0x28] sm:$0xff]  ;;  %v35_v18 = vld [vmem:[#allocation3 + $0x20] sm:$0xff]  ;;  %vm263_vm1 = vcmask 31744   ;;  %s479_s1 = smov 124   ;;  %s480_s18 = smov 125  }
  0x12   :  { %383 = vmatprep.subr.mxu1 %v46_v4  ;;  %343 = vmatprep.subr.mxu0 %v46_v4  ;;  %v34_v19 = vld [vmem:[#allocation3 + $0x18] sm:$0xff]  ;;  %v33_v20 = vld [vmem:[#allocation3 + $0x10] sm:$0xff]  ;;  %v32_v21 = vld [vmem:[#allocation3 + $0x8] sm:$0xff]  ;;  %vm303_vm2 = vcmask 7168   ;;  %vm305_vm3 = vcmask 39936  }
  0x13   :  { %432 = vset.pattern.permute.xlu1 %v471_v5  ;;  %430 = vset.pattern.permute.xlu0 %v472_v6  ;;  %v317_v26 = vld [vmem:[#allocation3 + $0x5] ss:$0 sm:$0xff]  ;;  %v315_v27 = vld [vmem:[#allocation3] ss:$0 sm:$0xff]  ;;  %v316_v29 = vld [vmem:[#allocation3 + $0x1] ss:$0 sm:$0xff] }
  0x14   :  { %102 = vperm.xlu1 %432, %v502_v2   ;;  %86 = vperm.xlu0 %430, %v502_v2   ;;  %v313_v42 = vld [vmem:[#allocation3 + $0x2] ss:$0 sm:$0xff]  ;;  %v314_v45 = vld [vmem:[#allocation3 + $0x3] ss:$0 sm:$0xff]  ;;  %v318_v55 = vld [vmem:[#allocation3 + $0x4] ss:$0 sm:$0xff] }
  0x15   :  { %399 = vmatpush3.msra.mxu1 %v46_v4  ;;  %344 = vmatpush3.msra.mxu0 %v46_v4 }
  0x16   :  { %384 = vmatprep.subr.mxu1 %v45_v7  ;;  %345 = vmatprep.subr.mxu0 %v45_v7 }
  0x17   :  { %400 = vmatpush3.msra.mxu1 %v45_v7  ;;  %346 = vmatpush3.msra.mxu0 %v45_v7 }
  0x18   :  { %433 = vset.pattern.permute.xlu1 %v473_v10  ;;  %385 = vmatprep.subr.mxu1 %v44_v8 }
  0x19   :  { %50 = vperm.xlu1 %433, %v502_v2   ;;  %401 = vmatpush3.msra.mxu1 %v44_v8 }
  0x1a   :  { %386 = vmatprep.subr.mxu1 %v43_v9  ;;  %347 = vmatprep.subr.mxu0 %v44_v8 }
  0x1b   :  { %402 = vmatpush3.msra.mxu1 %v43_v9  ;;  %348 = vmatpush3.msra.mxu0 %v44_v8 }
  0x1c   :  { %387 = vmatprep.subr.mxu1 %v42_v11  ;;  %349 = vmatprep.subr.mxu0 %v43_v9 }
  0x1d   :  { %403 = vmatpush3.msra.mxu1 %v42_v11  ;;  %350 = vmatpush3.msra.mxu0 %v43_v9 }
  0x1e   :  { %388 = vmatprep.subr.mxu1 %v41_v12  ;;  %351 = vmatprep.subr.mxu0 %v42_v11 }
  0x1f   :  { %404 = vmatpush3.msra.mxu1 %v41_v12  ;;  %352 = vmatpush3.msra.mxu0 %v42_v11 }
  0x20   :  { %389 = vmatprep.subr.mxu1 %v40_v13  ;;  %353 = vmatprep.subr.mxu0 %v41_v12 }
  0x21   :  { %405 = vmatpush3.msra.mxu1 %v40_v13  ;;  %354 = vmatpush3.msra.mxu0 %v41_v12 }
  0x22   :  { %390 = vmatprep.subr.mxu1 %v39_v14  ;;  %355 = vmatprep.subr.mxu0 %v40_v13 }
  0x23   :  { %406 = vmatpush3.msra.mxu1 %v39_v14  ;;  %356 = vmatpush3.msra.mxu0 %v40_v13 }
  0x24   :  { %391 = vmatprep.subr.mxu1 %v38_v15  ;;  %357 = vmatprep.subr.mxu0 %v39_v14 }
  0x25   :  { %407 = vmatpush3.msra.mxu1 %v38_v15  ;;  %358 = vmatpush3.msra.mxu0 %v39_v14 }
  0x26   :  { %392 = vmatprep.subr.mxu1 %v37_v16  ;;  %359 = vmatprep.subr.mxu0 %v38_v15 }
  0x27   :  { %408 = vmatpush3.msra.mxu1 %v37_v16  ;;  %360 = vmatpush3.msra.mxu0 %v38_v15 }
  0x28   :  { %393 = vmatprep.subr.mxu1 %v36_v17  ;;  %361 = vmatprep.subr.mxu0 %v37_v16 }
  0x29   :  { %409 = vmatpush3.msra.mxu1 %v36_v17  ;;  %362 = vmatpush3.msra.mxu0 %v37_v16 }
  0x2a   :  { %394 = vmatprep.subr.mxu1 %v35_v18  ;;  %363 = vmatprep.subr.mxu0 %v36_v17 }
  0x2b   :  { %410 = vmatpush3.msra.mxu1 %v35_v18  ;;  %364 = vmatpush3.msra.mxu0 %v36_v17 }
  0x2c   :  { %395 = vmatprep.subr.mxu1 %v34_v19  ;;  %365 = vmatprep.subr.mxu0 %v35_v18 }
  0x2d   :  { %411 = vmatpush3.msra.mxu1 %v34_v19  ;;  %366 = vmatpush3.msra.mxu0 %v35_v18 }
  0x2e   :  { %396 = vmatprep.subr.mxu1 %v33_v20  ;;  %367 = vmatprep.subr.mxu0 %v34_v19 }
  0x2f   :  { %412 = vmatpush3.msra.mxu1 %v33_v20  ;;  %368 = vmatpush3.msra.mxu0 %v34_v19 }
  0x30   :  { %397 = vmatprep.subr.mxu1 %v32_v21  ;;  %369 = vmatprep.subr.mxu0 %v33_v20 }
  0x31   :  { %413 = vmatpush3.msra.mxu1 %v32_v21  ;;  %370 = vmatpush3.msra.mxu0 %v33_v20 }
  0x32   :  { %371 = vmatprep.subr.mxu0 %v32_v21  ;;  %435 = vset.pattern.permute.xlu1 %v474_v22 }
  0x33   :  { %372 = vmatpush3.msra.mxu0 %v32_v21  ;;  %234 = vperm.xlu1 %435, %v502_v2  }
  0x34   :  { %434 = vset.pattern.permute.xlu0 %v475_v23 }
  0x35   :  { %226 = vperm.xlu0 %434, %v502_v2  }
  0x37   :  { %436 = vset.pattern.permute.xlu1 %v476_v24 }
  0x38   :  { %242 = vperm.xlu1 %436, %v502_v2  }
  0x39   :  { %437 = vset.pattern.permute.xlu0 %v477_v25 }
  0x3a   :  { %250 = vperm.xlu0 %437, %v502_v2  }
  0x3c   :  { %215 = vrot.lane.b32.xlu1 %v317_v26, %s478_s0 }
  0x8a   :  { %v79_v28 = vpop.permute.xlu0 %78  ;;  %v95_v30 = vpop.permute.xlu1 %94 }
  0x8b   :  { %v81_v31 = vmul.f32 %v315_v27, %v79_v28  ;;  %v97_v32 = vmul.f32 %v315_v27, %v95_v30 }
  0x8d   :  { %v82_v33 = vadd.f32 %v316_v29, %v81_v31  ;;  %v98_v39 = vadd.f32 %v316_v29, %v97_v32 }
  0x8f   :  { %v87_v34 = vpop.permute.xlu0 %86  ;;  %v103_v35 = vpop.permute.xlu1 %102  ;;  %v83_v36 = vmax.f32 %v82_v33, 0.0  ;;  %v99_v46 = vmax.f32 %v98_v39, 0.0 }
  0x90   :  { %v89_v37 = vmul.f32 %v315_v27, %v87_v34  ;;  %v105_v38 = vmul.f32 %v315_v27, %v103_v35 }
  0x91   :  { %376 = vmatprep.mubr.f32.mxu1 %v83_v36 }
  0x92   :  { %v90_v40 = vadd.f32 %v316_v29, %v89_v37  ;;  %v106_v41 = vadd.f32 %v316_v29, %v105_v38 }
  0x94   :  { %v91_v43 = vmax.f32 %v90_v40, 0.0  ;;  %v51_v44 = vpop.permute.xlu1 %50  ;;  %v107_v49 = vmax.f32 %v106_v41, 0.0 }
  0x95   :  { %v57_v47 = vmul.f32 %v313_v42, %v51_v44  ;;  %v69_v48 = vmul.f32 %v315_v27, %v51_v44 }
  0x96   :  { %377 = vmatmul.mubr.f32.vlgmr.msra.gmra.mxu1 %v91_v43 }
  0x97   :  { %v74_v50 = vadd.f32 %v316_v29, %v69_v48  ;;  %379 = vmatprep.mubr.f32.mxu1 %v99_v46  ;;  %v62_v51 = vadd.f32 %v314_v45, %v57_v47 }
  0x99   :  { %v63_v52 = vmax.f32 %v62_v51, 0.0  ;;  %v75_v53 = vmax.f32 %v74_v50, 0.0 }
  0x9a   :  { %380 = vmatmul.mubr.f32.gmra.mxu1 %v107_v49 }
  0x9b   :  { %373 = vmatprep.mubr.f32.mxu0 %v63_v52 }
  0x9c   :  { %374 = vmatmul.mubr.f32.vlgmr.msra.gmra.mxu0 %v75_v53 }
  0xae   :  { %v235_v54 = vpop.permute.xlu1 %234 }
  0xb0   :  { %v227_v56 = vpop.permute.xlu0 %226 }
  0xb3   :  { %v243_v57 = vpop.permute.xlu1 %242 }
  0xb5   :  { %v251_v2 = vpop.permute.xlu0 %250 }
  0xb7   :  { %v216_v3 = vpop.permute.xlu1 %215 }
 0x156   :  { %v378_v58 = vpop.f32.mrf.mxu1 }
 0x157   :  { %v232_v59 = vadd.f32 %v378_v58, %v318_v55 }
 0x158   :  { %v191_v60 = vpop.f32.mrf.mxu1 }
 0x159   :  { %v224_v61 = vadd.f32 %v318_v55, %v191_v60  ;;  %v237_v63 = vsub.f32 %v232_v59, %v235_v54 }
 0x15a   :  { %v381_v62 = vpop.f32.mrf.mxu1 }
 0x15b   :  { %v229_v0 = vsub.f32 %v224_v61, %v227_v56  ;;  %v248_v1 = vadd.f32 %v381_v62, %v318_v55  ;;  %v238_v10 = vmul.f32 %v237_v63, %v237_v63 }
 0x15c   :  { %v375_v4 = vpop.f32.mrf.mxu0  ;;  %v201_v5 = vpop.f32.mrf.mxu1 }
 0x15d   :  { %v230_v6 = vmul.f32 %v229_v0, %v229_v0  ;;  %v223_v7 = vadd.f32 %v375_v4, %v318_v55  ;;  %v240_v8 = vadd.f32 %v318_v55, %v201_v5  ;;  %v253_v12 = vsub.f32 %v248_v1, %v251_v2 }
 0x15e   :  { %v181_v9 = vpop.f32.mrf.mxu0 }
 0x15f   :  { %v245_v11 = vsub.f32 %v240_v8, %v243_v57  ;;  %v218_v13 = vadd.f32 %v216_v3, %v181_v9  ;;  %v239_v14 = vadd.f32 %v238_v10, %v230_v6  ;;  %v254_v17 = vmul.f32 %v253_v12, %v253_v12 }
 0x161   :  { %v246_v15 = vmul.f32 %v245_v11, %v245_v11  ;;  %v257_v16 = vsel %vm256_vm0, %v218_v13, -inf }
 0x162   :  { %258 = vmax.xlane.f32.xlu0 %v257_v16 }
 0x163   :  { %v247_v18 = vadd.f32 %v246_v15, %v239_v14 }
 0x165   :  { %v255_v19 = vadd.f32 %v254_v17, %v247_v18 }
 0x167   :  { %v264_v20 = vsel %vm263_vm1, %v255_v19, inf }
 0x168   :  { %265 = vmin.xlane.f32.xlu1 %v264_v20 }
 0x1eb   :  { %v259_v25 = vpop.xlane.xlu0 %258 }
 0x1ec   :  { %v260_v26 = vsub.f32 %v218_v13, %v259_v25 }
 0x1ee   :  { %v261_v27 = vmul.f32 1.442695, %v260_v26 }
 0x1f1   :  { %v266_v21 = vpop.xlane.xlu1 %265 }
 0x1f2   :  { %v267_v22 = vsub.f32 %v266_v21, %v255_v19 }
 0x1f4   :  { %v268_v23 = vmul.f32 1.442695, %v267_v22 }
 0x1f6   :  { %438 = vpow2.f32 %v268_v23 }
 0x1f7   :  { %440 = vpow2.f32 %v261_v27 }
 0x203   :  { %v439_v24 = vpop.eup %438 }
 0x204   :  { %271 = vrot.lane.b32.xlu0 %v439_v24, %s478_s0  ;;  %v441_v28 = vpop.eup %440 }
 0x208   :  { %288 = vrot.lane.b32.xlu0 %v223_v7, %s478_s0 }
 0x276   :  { %v272_v29 = vpop.permute.xlu0 %271 }
 0x277   :  { %v274_v30 = vmul.f32 %v441_v28, %v272_v29 }
 0x279   :  { %276 = vrot.lane.b32.xlu1 %v274_v30, %s479_s1 }
 0x27a   :  { %v289_v39 = vpop.permute.xlu0 %288 }
 0x2eb   :  { %v277_v31 = vpop.permute.xlu1 %276 }
 0x2ec   :  { %v279_v32 = vsel %vm263_vm1, %v277_v31, 0.0 }
 0x2ed   :  { %280 = vadd.xlane.f32.xlu1 %v279_v32 }
 0x376   :  { %v281_v33 = vpop.xlane.xlu1 %280 }
 0x377   :  { %442 = vrcp.f32 %v281_v33 }
 0x384   :  { %v443_v34 = vpop.eup %442 }
 0x385   :  { %v283_v35 = vmul.f32 %v443_v34, %v281_v33 }
 0x387   :  { %v284_v36 = vsub.f32 2.0, %v283_v35 }
 0x389   :  { %v285_v37 = vmul.f32 %v443_v34, %v284_v36 }
 0x38b   :  { %v286_v38 = vmul.f32 %v285_v37, %v274_v30 }
 0x38d   :  { %300 = vrot.lane.b32.xlu1 %v286_v38, %s480_s18  ;;  %v291_v40 = vmul.f32 %v289_v39, %v286_v38 }
 0x38f   :  { %293 = vrot.lane.b32.xlu0 %v291_v40, %s479_s1 }
 0x3ff   :  { %v301_v43 = vpop.permute.xlu1 %300 }
 0x401   :  { %v294_v41 = vpop.permute.xlu0 %293 }
 0x402   :  { %v296_v42 = vsel %vm263_vm1, %v294_v41, 0.0 }
 0x403   :  { %297 = vadd.xlane.f32.xlu0 %v296_v42 }
 0x48c   :  { %v298_v44 = vpop.xlane.xlu0 %297 }
 0x48d   :  { %v304_v45 = vsel %vm303_vm2, %v298_v44, %v301_v43 }
 0x48e   :  { %v306_v46 = vsel %vm305_vm3, %v304_v45, 0.0 }
 0x48f   :  { %307 = vst [vmem:[%s524_s2] sm:$0xff] %v306_v46 }
 0x490   :  { %312 = vsyncpa [#allocation4], 1 }

</bundles_post_ra>
